<compile_context>
chip_gen: v7x
topology: tpu7x:2x2x1
jax: 0.10.0
libtpu: 0.0.40
codegen_flags: <defaults>
</compile_context>

<pallas_src>
import math
import functools

import jax
import jax.numpy as jnp
from jax import lax
from jax.experimental import pallas as pl
from jax.experimental.pallas import tpu as pltpu


# --------------------------------------------------------------------------- #
# Tiled linear kernels                                                         #
# --------------------------------------------------------------------------- #
def _linear_kernel(x_ref, w_ref, b_ref, o_ref):
    acc = jnp.dot(x_ref[...], w_ref[...], preferred_element_type=jnp.float32)
    o_ref[...] = (acc + b_ref[...]).astype(o_ref.dtype)


def _linear_softmax_kernel(x_ref, w_ref, b_ref, o_ref, *, n_groups, group_size):
    """Linear projection fused with a per-group (per-head) softmax epilogue."""
    logits = jnp.dot(x_ref[...], w_ref[...],
                     preferred_element_type=jnp.float32) + b_ref[...]
    for g in range(n_groups):
        lg = logits[:, g * group_size:(g + 1) * group_size]
        m = jnp.max(lg, axis=-1, keepdims=True)
        e = jnp.exp(lg - m)
        s = jnp.sum(e, axis=-1, keepdims=True)
        o_ref[:, g * group_size:(g + 1) * group_size] = (
            e * pl.reciprocal(s, approx=True)).astype(o_ref.dtype)


def _tiled_rowwise_call(kernel, x, w, b, *, tile_m=256):
    """Run `kernel` over row tiles of x with W / bias resident in VMEM."""
    M, K = x.shape
    n_out = w.shape[1]
    tm = min(tile_m, M)
    grid = (pl.cdiv(M, tm),)
    return pl.pallas_call(
        kernel,
        out_shape=jax.ShapeDtypeStruct((M, n_out), jnp.float32),
        grid=grid,
        in_specs=[
            pl.BlockSpec((tm, K), lambda i: (i, 0)),
            pl.BlockSpec((K, n_out), lambda i: (0, 0)),
            pl.BlockSpec((1, n_out), lambda i: (0, 0)),
        ],
        out_specs=pl.BlockSpec((tm, n_out), lambda i: (i, 0)),
        compiler_params=pltpu.CompilerParams(
            dimension_semantics=("parallel",),
            vmem_limit_bytes=32 * 1024 * 1024),
    )(x, w, b.reshape(1, n_out))


def linear(x, w, b, *, tile_m=256):
    """x: (M, K) f32, w: (K, N) f32, b: (N,) f32 -> (M, N) f32."""
    return _tiled_rowwise_call(_linear_kernel, x, w, b, tile_m=tile_m)


def linear_groupsoftmax(x, w, b, *, n_groups, group_size, tile_m=256):
    """Linear followed by softmax over contiguous column groups of `group_size`."""
    kernel = functools.partial(_linear_softmax_kernel,
                               n_groups=n_groups, group_size=group_size)
    return _tiled_rowwise_call(kernel, x, w, b, tile_m=tile_m)


# --------------------------------------------------------------------------- #
# Deformable attention core kernel                                             #
# --------------------------------------------------------------------------- #
def _deform_core_kernel(value_ref, locx_ref, locy_ref, attn_ref, out_ref, *,
                        n_heads, n_points, d_head, level_dims):
    """One (batch, query-tile) block.

    value_ref : (1, Len_in, C)  bf16
    locx_ref  : (1, tq, L*H*P)  f32, level-major column layout [l][h][p]
    locy_ref  : (1, tq, L*H*P)  f32
    attn_ref  : (1, tq, L*H*P)  f32 (already softmaxed per head)
    out_ref   : (1, tq, C)      f32
    level_dims: static tuple of (H_l, W_l, start_l) Python ints
    """
    tq = locx_ref.shape[1]
    HP = n_heads * n_points

    # ---- vectorized sampling math: all heads & points of a level at once ----
    corner_w = []    # per level: 4 arrays of (tq, HP) f32 (attn * bilinear * valid)
    corner_idx = []  # per level: 4 arrays of (tq, HP) i32 (level-local index, -1 if OOB)
    for l, (H, W, _start) in enumerate(level_dims):
        lx = locx_ref[0, :, l * HP:(l + 1) * HP]
        ly = locy_ref[0, :, l * HP:(l + 1) * HP]
        aw = attn_ref[0, :, l * HP:(l + 1) * HP]
        # grid_sample(align_corners=False): pixel = loc * size - 0.5
        x = lx * float(W) - 0.5
        y = ly * float(H) - 0.5
        x0 = jnp.floor(x)
        y0 = jnp.floor(y)
        fx = x - x0
        fy = y - y0
        x0i = x0.astype(jnp.int32)
        y0i = y0.astype(jnp.int32)
        cw, ci = [], []
        for dy in (0, 1):
            wy = fy if dy == 1 else 1.0 - fy
            for dx in (0, 1):
                wx = fx if dx == 1 else 1.0 - fx
                xi = x0i + dx
                yi = y0i + dy
                valid = (xi >= 0) & (xi < W) & (yi >= 0) & (yi < H)
                cw.append(aw * wx * wy * valid.astype(jnp.float32))
                # level-local flat index; -1 never matches the iota (zero padding)
                ci.append(jnp.where(valid, yi * W + xi, -1))
        corner_w.append(cw)
        corner_idx.append(ci)

    # ---- per-head aggregation via level-restricted one-hot MXU contraction ----
    for h in range(n_heads):
        acc = jnp.zeros((tq, d_head), jnp.float32)
        for l, (H, W, start) in enumerate(level_dims):
            HW = H * W
            col_iota = lax.broadcasted_iota(jnp.int32, (tq, HW), 1)
            A = jnp.zeros((tq, HW), jnp.float32)
            for p in range(n_points):
                c = h * n_points + p
                for k in range(4):
                    w_col = corner_w[l][k][:, c:c + 1]
                    i_col = corner_idx[l][k][:, c:c + 1]
                    A = A + w_col * (i_col == col_iota).astype(jnp.float32)
            # (HW, d_head) bf16 sub-tile of value for this (level, head)
            v_hl = value_ref[0, start:start + HW, h * d_head:(h + 1) * d_head]
            acc = acc + jnp.dot(A.astype(jnp.bfloat16), v_hl,
                                preferred_element_type=jnp.float32)
        # write head slice directly (no concatenate of narrow pieces)
        out_ref[0, :, h * d_head:(h + 1) * d_head] = acc.astype(out_ref.dtype)


def deform_attn_core(value, locx, locy, attn, *, n_heads, n_points, level_dims,
                     q_tile=256):
    N, Len_in, C = value.shape
    Lq = locx.shape[1]
    LHP = locx.shape[2]
    d_head = C // n_heads
    tq = min(q_tile, Lq)
    n_q = pl.cdiv(Lq, tq)
    kernel = functools.partial(_deform_core_kernel, n_heads=n_heads,
                               n_points=n_points, d_head=d_head,
                               level_dims=tuple(level_dims))
    return pl.pallas_call(
        kernel,
        out_shape=jax.ShapeDtypeStruct((N, Lq, C), jnp.float32),
        grid=(N, n_q),
        in_specs=[
            # value block is constant along the query-tile axis -> fetched once
            # per batch and reused across all query tiles.
            pl.BlockSpec((1, Len_in, C), lambda b, q: (b, 0, 0)),
            pl.BlockSpec((1, tq, LHP), lambda b, q: (b, q, 0)),
            pl.BlockSpec((1, tq, LHP), lambda b, q: (b, q, 0)),
            pl.BlockSpec((1, tq, LHP), lambda b, q: (b, q, 0)),
        ],
        out_specs=pl.BlockSpec((1, tq, C), lambda b, q: (b, q, 0)),
        compiler_params=pltpu.CompilerParams(
            dimension_semantics=("parallel", "parallel"),
            vmem_limit_bytes=64 * 1024 * 1024),
    )(value, locx, locy, attn)


# --------------------------------------------------------------------------- #
# Parameter init (matches MSDeformQOAttn._reset_parameters, has_flow=False)    #
# --------------------------------------------------------------------------- #
def init_params(key, d_model, n_levels, n_heads, n_points):
    kv, ko = jax.random.split(key)

    def xavier(k, fan_in, fan_out):
        bound = math.sqrt(6.0 / (fan_in + fan_out))
        return jax.random.uniform(k, (fan_in, fan_out), jnp.float32, -bound, bound)

    # sampling_offsets: weight = 0, bias = directional grid init
    thetas = jnp.arange(n_heads, dtype=jnp.float32) * (2.0 * math.pi / n_heads)
    grid_init = jnp.stack([jnp.cos(thetas), jnp.sin(thetas)], -1)          # (H, 2)
    grid_init = grid_init / jnp.max(jnp.abs(grid_init), axis=-1, keepdims=True)
    grid_init = jnp.tile(grid_init.reshape(n_heads, 1, 1, 2),
                         (1, n_levels, n_points, 1))
    scale = jnp.arange(1, n_points + 1, dtype=jnp.float32).reshape(1, 1, n_points, 1)
    grid_init = grid_init * scale                                          # (H, L, P, 2)

    return {
        "W_off": jnp.zeros((d_model, n_heads * n_levels * n_points * 2), jnp.float32),
        "b_off": grid_init.reshape(-1),
        "W_attn": jnp.zeros((d_model, n_heads * n_levels * n_points), jnp.float32),
        "b_attn": jnp.zeros((n_heads * n_levels * n_points,), jnp.float32),
        "W_val": xavier(kv, d_model, d_model),
        "b_val": jnp.zeros((d_model,), jnp.float32),
        "W_out": xavier(ko, d_model, d_model),
        "b_out": jnp.zeros((d_model,), jnp.float32),
    }


# --------------------------------------------------------------------------- #
# Forward (== MSDeformQOAttn.forward, has_flow=False / flow=None)              #
# --------------------------------------------------------------------------- #
# TODO(synk): the `flow is not None` branch (spynet.flow_warp + per-frame
#             offsets) is not implemented; only the default flow=None path is.
#             Note the reference flow=None path never defines attention_weights
#             (upstream bug) — the standard MSDeformAttn softmax(attention
#             weights(query)) over levels*points is used here.
def ms_deform_attn_forward(params, query, reference_points, input_flatten,
                           input_spatial_shapes, input_level_start_index=None,
                           input_padding_mask=None, *,
                           n_heads, n_levels, n_points, q_tile=256):
    """input_spatial_shapes must be a static sequence of (H_l, W_l) Python ints."""
    shapes = tuple((int(h), int(w)) for h, w in input_spatial_shapes)
    assert len(shapes) == n_levels
    starts, running = [], 0
    for (h, w) in shapes:
        starts.append(running)
        running += h * w
    level_dims = tuple((h, w, st) for (h, w), st in zip(shapes, starts))

    N, Lq, C = query.shape
    _, Len_in, _ = input_flatten.shape
    assert running == Len_in
    LP = n_levels * n_points
    LHP = n_levels * n_heads * n_points

    # value_proj (tiled Pallas matmul) + optional padding mask, then bf16 for MXU
    value = linear(input_flatten.reshape(N * Len_in, C),
                   params["W_val"], params["b_val"]).reshape(N, Len_in, C)
    if input_padding_mask is not None:
        value = jnp.where(input_padding_mask[..., None], 0.0, value)
    value = value.astype(jnp.bfloat16)

    q2 = query.reshape(N * Lq, C)
    offsets = linear(q2, params["W_off"], params["b_off"]).reshape(
        N, Lq, n_heads, n_levels, n_points, 2)
    # attention weights: linear + per-head softmax fused in a single Pallas kernel
    attn = linear_groupsoftmax(q2, params["W_attn"], params["b_attn"],
                               n_groups=n_heads, group_size=LP).reshape(
        N, Lq, n_heads, n_levels, n_points)

    if reference_points.shape[-1] == 2:
        offset_normalizer = jnp.array([[w, h] for (h, w) in shapes], jnp.float32)
        sampling_locations = (reference_points[:, :, None, :, None, :]
                              + offsets / offset_normalizer[None, None, None, :, None, :])
    elif reference_points.shape[-1] == 4:
        sampling_locations = (reference_points[:, :, None, :, None, :2]
                              + offsets / n_points
                              * reference_points[:, :, None, :, None, 2:] * 0.5)
    else:
        raise ValueError("Last dim of reference_points must be 2 or 4.")

    # Level-major flattening so each level's columns form one contiguous, static
    # slice inside the core kernel (x / y split avoids strided lane slicing).
    loc_lm = jnp.transpose(sampling_locations, (0, 1, 3, 2, 4, 5))  # (N,Lq,L,H,P,2)
    locx = loc_lm[..., 0].reshape(N, Lq, LHP).astype(jnp.float32)
    locy = loc_lm[..., 1].reshape(N, Lq, LHP).astype(jnp.float32)
    attn_lm = jnp.transpose(attn, (0, 1, 3, 2, 4)).reshape(
        N, Lq, LHP).astype(jnp.float32)

    core = deform_attn_core(value, locx, locy, attn_lm,
                            n_heads=n_heads, n_points=n_points,
                            level_dims=level_dims, q_tile=q_tile)

    output = linear(core.reshape(N * Lq, C),
                    params["W_out"], params["b_out"]).reshape(N, Lq, C)
    return output, sampling_locations


# --------------------------------------------------------------------------- #
if __name__ == "__main__":
    d_model, n_heads, n_levels, n_points = 32, 4, 2, 4
    N, Lq = 2, 8
    spatial_shapes = ((8, 8), (4, 4))                        # static (H_l, W_l)
    level_start = tuple([0, spatial_shapes[0][0] * spatial_shapes[0][1]])
    Len_in = sum(h * w for h, w in spatial_shapes)           # 80

    key = jax.random.PRNGKey(0)
    kq, kr, kf, kp = jax.random.split(key, 4)
    query = jax.random.normal(kq, (N, Lq, d_model), jnp.float32)
    reference_points = jax.random.uniform(kr, (N, Lq, n_levels, 2), jnp.float32)
    input_flatten = jax.random.normal(kf, (N, Len_in, d_model), jnp.float32)

    params = init_params(kp, d_model, n_levels, n_heads, n_points)

    output, sampling_locations = ms_deform_attn_forward(
        params, query, reference_points, input_flatten,
        spatial_shapes, level_start, input_padding_mask=None,
        n_heads=n_heads, n_levels=n_levels, n_points=n_points)

    jax.block_until_ready((output, sampling_locations))
    assert output.shape == (N, Lq, d_model)
    assert sampling_locations.shape == (N, Lq, n_heads, n_levels, n_points, 2)
    assert bool(jnp.all(jnp.isfinite(output)))
    print("KERNEL_OK")
</pallas_src>

<mosaic_0001>
module attributes {stable_mosaic.version = 11 : i64} {
  func.func @_linear_kernel(%arg0: i32, %arg1: memref<160x32xf32, #tpu.memory_space<vmem>>, %arg2: memref<32x32xf32, #tpu.memory_space<vmem>>, %arg3: memref<1x32xf32, #tpu.memory_space<vmem>>, %arg4: memref<160x32xf32, #tpu.memory_space<vmem>>) attributes {dimension_semantics = [#tpu.dimension_semantics<parallel>], iteration_bounds = array<i64: 1>, scalar_prefetch = 0 : i64, scratch_operands = 0 : i64, tpu.core_type = #tpu.core_type<tc>, window_params = [{transform_indices = @transform_0, window_bounds = array<i64: 160, 32>}, {pipeline_mode = #tpu.pipeline_mode<synchronous>, transform_indices = @transform_1, window_bounds = array<i64: 32, 32>}, {pipeline_mode = #tpu.pipeline_mode<synchronous>, transform_indices = @transform_2, window_bounds = array<i64: 1, 32>}, {transform_indices = @transform_3, window_bounds = array<i64: 160, 32>}]} {
    %c0 = arith.constant 0 : index
    %c0_0 = arith.constant 0 : index
    %0 = vector.load %arg1[%c0, %c0_0] : memref<160x32xf32, #tpu.memory_space<vmem>>, vector<160x32xf32>
    %c0_1 = arith.constant 0 : index
    %c0_2 = arith.constant 0 : index
    %1 = vector.load %arg2[%c0_1, %c0_2] : memref<32x32xf32, #tpu.memory_space<vmem>>, vector<32x32xf32>
    %cst = arith.constant dense<0.000000e+00> : vector<160x32xf32>
    %2 = tpu.matmul %0, %1, %cst {dimension_numbers = #tpu.dot_dimension_numbers<[1], [0], [0], [1], [0, 0, 1, 1], [], []>} : vector<160x32xf32>, vector<32x32xf32>, vector<160x32xf32> -> vector<160x32xf32>
    %c0_3 = arith.constant 0 : index
    %c0_4 = arith.constant 0 : index
    %3 = vector.load %arg3[%c0_3, %c0_4] : memref<1x32xf32, #tpu.memory_space<vmem>>, vector<1x32xf32>
    %4 = vector.broadcast %3 : vector<1x32xf32> to vector<160x32xf32>
    %5 = arith.addf %2, %4 : vector<160x32xf32>
    %c0_5 = arith.constant 0 : index
    %c0_6 = arith.constant 0 : index
    %6 = vector.load %arg4[%c0_5, %c0_6] : memref<160x32xf32, #tpu.memory_space<vmem>>, vector<160x32xf32>
    tpu.vector_store %arg4[%c0_5, %c0_6], %5 {strides = array<i32>} : memref<160x32xf32, #tpu.memory_space<vmem>>, vector<160x32xf32>,
    return
  }
  func.func @transform_0(%arg0: i32) -> (i32, i32) {
    %c0_i32 = arith.constant 0 : i32
    %c0_i32_0 = arith.constant 0 : i32
    return %arg0, %c0_i32 : i32, i32
  }
  func.func @transform_1(%arg0: i32) -> (i32, i32) {
    %c0_i32 = arith.constant 0 : i32
    %c0_i32_0 = arith.constant 0 : i32
    %c0_i32_1 = arith.constant 0 : i32
    return %c0_i32, %c0_i32_0 : i32, i32
  }
  func.func @transform_2(%arg0: i32) -> (i32, i32) {
    %c0_i32 = arith.constant 0 : i32
    %c0_i32_0 = arith.constant 0 : i32
    %c0_i32_1 = arith.constant 0 : i32
    return %c0_i32, %c0_i32_0 : i32, i32
  }
  func.func @transform_3(%arg0: i32) -> (i32, i32) {
    %c0_i32 = arith.constant 0 : i32
    %c0_i32_0 = arith.constant 0 : i32
    return %arg0, %c0_i32 : i32, i32
  }
}

</mosaic_0001>

<bundles_post_ra>
// kernel: tpu_custom_call.1
= control target key start
LH: loop header
LB: loop body
LE: loop exit
PB: predicated region body
PF: predicated region fallthrough
CT: control target
= control target key end

     0   :  { %vm45_vm0 = vcmask 261120   ;;  %s585_s1 = inlined_call_operand.vmem [shape: f32[32,32], index: 1, kind: input, shape index: {}]   ;;  %s586_s0 = inlined_call_operand.vmem [shape: f32[160,32], index: 0, kind: input, shape index: {}]   ;;  %s587_s2 = inlined_call_operand.vmem [shape: f32[1,32], index: 2, kind: input, shape index: {}]   ;;  %s588_s3 = inlined_call_operand.vmem [shape: f32[160,32], index: 3, kind: output, shape index: {}]  }
   0x1   :  { %v34_v0 = vld [vmem:[%s585_s1] sm:$0xff]  ;;  %v35_v1 = vld [vmem:[%s585_s1 + $0x8] sm:$0xff]  ;;  %v36_v2 = vld [vmem:[%s585_s1 + $0x10] sm:$0xff] }
   0x2   :  { %v378_v3 = vpack.c.bf16 %v35_v1, %v34_v0  ;;  %v37_v4 = vld [vmem:[%s585_s1 + $0x18] sm:$0xff]  ;;  %v14_v5 = vld [vmem:[%s586_s0] sm:$0xff]  ;;  %v24_v6 = vld [vmem:[%s586_s0 + $0x50] sm:$0xff] }
   0x3   :  { %v382_v7 = vpack.c.bf16 %v37_v4, %v36_v2  ;;  %348 = vmatprep.mubr.msk.f32.mxu0 %vm45_vm0, %v14_v5  ;;  %363 = vmatprep.mubr.msk.f32.mxu1 %vm45_vm0, %v24_v6  ;;  %v15_v8 = vld [vmem:[%s586_s0 + $0x8] sm:$0xff]  ;;  %v25_v9 = vld [vmem:[%s586_s0 + $0x58] sm:$0xff]  ;;  %v16_v10 = vld [vmem:[%s586_s0 + $0x10] sm:$0xff] }
   0x4   :  { %379 = vmatprep.subr.bf16.mxu0 %v378_v3  ;;  %386 = vmatprep.subr.bf16.mxu1 %v378_v3  ;;  %v26_v11 = vld [vmem:[%s586_s0 + $0x60] sm:$0xff]  ;;  %v17_v12 = vld [vmem:[%s586_s0 + $0x18] sm:$0xff]  ;;  %v27_v13 = vld [vmem:[%s586_s0 + $0x68] sm:$0xff] }
   0x5   :  { %381 = vmatpush3.bf16.msra.mxu0 %v378_v3  ;;  %388 = vmatpush3.bf16.msra.mxu1 %v378_v3  ;;  %v18_v14 = vld [vmem:[%s586_s0 + $0x20] sm:$0xff]  ;;  %v28_v15 = vld [vmem:[%s586_s0 + $0x70] sm:$0xff]  ;;  %v19_v16 = vld [vmem:[%s586_s0 + $0x28] sm:$0xff] }
   0x6   :  { %383 = vmatprep.subr.bf16.mxu0 %v382_v7  ;;  %387 = vmatprep.subr.bf16.mxu1 %v382_v7  ;;  %v29_v17 = vld [vmem:[%s586_s0 + $0x78] sm:$0xff]  ;;  %v20_v18 = vld [vmem:[%s586_s0 + $0x30] sm:$0xff]  ;;  %v30_v19 = vld [vmem:[%s586_s0 + $0x80] sm:$0xff] }
   0x7   :  { %v21_v20 = vld [vmem:[%s586_s0 + $0x38] sm:$0xff]  ;;  %v31_v21 = vld [vmem:[%s586_s0 + $0x88] sm:$0xff]  ;;  %v22_v22 = vld [vmem:[%s586_s0 + $0x40] sm:$0xff] }
   0x8   :  { %v32_v23 = vld [vmem:[%s586_s0 + $0x90] sm:$0xff]  ;;  %v23_v24 = vld [vmem:[%s586_s0 + $0x48] sm:$0xff]  ;;  %v33_v25 = vld [vmem:[%s586_s0 + $0x98] sm:$0xff] }
   0x9   :  { %385 = vmatpush3.bf16.msra.mxu0 %v382_v7  ;;  %389 = vmatpush3.bf16.msra.mxu1 %v382_v7  ;;  %v295_v26 = vld [vmem:[%s587_s2] ss:$0 sm:$0xff] }
   0xc   :  { %349 = vmatmul.mubr.msk.f32.vlgmr.msra.gmra.mrb[0].mxu0 %vm45_vm0, %v15_v8  ;;  %364 = vmatmul.mubr.msk.f32.vlgmr.msra.gmra.mrb[0].mxu1 %vm45_vm0, %v25_v9 }
   0xd   :  { %351 = vmatprep.mubr.msk.f32.mxu0 %vm45_vm0, %v16_v10  ;;  %366 = vmatprep.mubr.msk.f32.mxu1 %vm45_vm0, %v26_v11 }
  0x10   :  { %352 = vmatmul.mubr.msk.f32.gmra.mrb[2].mxu0 %vm45_vm0, %v17_v12  ;;  %367 = vmatmul.mubr.msk.f32.gmra.mrb[2].mxu1 %vm45_vm0, %v27_v13 }
  0x11   :  { %354 = vmatprep.mubr.msk.f32.mxu0 %vm45_vm0, %v18_v14  ;;  %369 = vmatprep.mubr.msk.f32.mxu1 %vm45_vm0, %v28_v15 }
  0x14   :  { %355 = vmatmul.mubr.msk.f32.gmra.mrb[4].mxu0 %vm45_vm0, %v19_v16  ;;  %370 = vmatmul.mubr.msk.f32.gmra.mrb[4].mxu1 %vm45_vm0, %v29_v17 }
  0x15   :  { %357 = vmatprep.mubr.msk.f32.mxu0 %vm45_vm0, %v20_v18  ;;  %372 = vmatprep.mubr.msk.f32.mxu1 %vm45_vm0, %v30_v19 }
  0x18   :  { %358 = vmatmul.mubr.msk.f32.gmra.mrb[6].mxu0 %vm45_vm0, %v21_v20  ;;  %373 = vmatmul.mubr.msk.f32.gmra.mrb[6].mxu1 %vm45_vm0, %v31_v21 }
  0x19   :  { %360 = vmatprep.mubr.msk.f32.mxu0 %vm45_vm0, %v22_v22  ;;  %375 = vmatprep.mubr.msk.f32.mxu1 %vm45_vm0, %v32_v23 }
  0x1c   :  { %361 = vmatmul.mubr.msk.f32.gmra.mrb[8].mxu0 %vm45_vm0, %v23_v24  ;;  %376 = vmatmul.mubr.msk.f32.gmra.mrb[8].mxu1 %vm45_vm0, %v33_v25 }
  0xdf   :  { %v350_v27 = vpop.f32.mrb[0].mxu0  ;;  %v365_v28 = vpop.f32.mrb[0].mxu1 }
  0xe0   :  { %v178_v29 = vadd.f32 %v350_v27, %v295_v26  ;;  %v228_v30 = vadd.f32 %v365_v28, %v295_v26  ;;  %v172_v31 = vpop.f32.mrb[1].mxu0  ;;  %v222_v32 = vpop.f32.mrb[1].mxu1 }
  0xe1   :  { %v173_v33 = vadd.f32 %v295_v26, %v172_v31  ;;  %v223_v34 = vadd.f32 %v295_v26, %v222_v32 }
  0xe2   :  { %272 = vst.msk [vmem:[%s588_s3 + $0x8] sm:$0xff] %vm45_vm0, %v178_v29  ;;  %282 = vst.msk [vmem:[%s588_s3 + $0x58] sm:$0xff] %vm45_vm0, %v228_v30 }
  0xe3   :  { %271 = vst.msk [vmem:[%s588_s3] sm:$0xff] %vm45_vm0, %v173_v33  ;;  %281 = vst.msk [vmem:[%s588_s3 + $0x50] sm:$0xff] %vm45_vm0, %v223_v34  ;;  %v353_v35 = vpop.f32.mrb[2].mxu0  ;;  %v368_v36 = vpop.f32.mrb[2].mxu1 }
  0xe4   :  { %v188_v37 = vadd.f32 %v353_v35, %v295_v26  ;;  %v238_v38 = vadd.f32 %v368_v36, %v295_v26  ;;  %v182_v39 = vpop.f32.mrb[3].mxu0  ;;  %v232_v40 = vpop.f32.mrb[3].mxu1 }
  0xe5   :  { %v183_v41 = vadd.f32 %v295_v26, %v182_v39  ;;  %v233_v42 = vadd.f32 %v295_v26, %v232_v40 }
  0xe6   :  { %274 = vst.msk [vmem:[%s588_s3 + $0x18] sm:$0xff] %vm45_vm0, %v188_v37  ;;  %284 = vst.msk [vmem:[%s588_s3 + $0x68] sm:$0xff] %vm45_vm0, %v238_v38 }
  0xe7   :  { %273 = vst.msk [vmem:[%s588_s3 + $0x10] sm:$0xff] %vm45_vm0, %v183_v41  ;;  %283 = vst.msk [vmem:[%s588_s3 + $0x60] sm:$0xff] %vm45_vm0, %v233_v42  ;;  %v356_v43 = vpop.f32.mrb[4].mxu0  ;;  %v371_v44 = vpop.f32.mrb[4].mxu1 }
  0xe8   :  { %v198_v45 = vadd.f32 %v356_v43, %v295_v26  ;;  %v248_v46 = vadd.f32 %v371_v44, %v295_v26  ;;  %v192_v47 = vpop.f32.mrb[5].mxu0  ;;  %v242_v48 = vpop.f32.mrb[5].mxu1 }
  0xe9   :  { %v193_v49 = vadd.f32 %v295_v26, %v192_v47  ;;  %v243_v50 = vadd.f32 %v295_v26, %v242_v48 }
  0xea   :  { %276 = vst.msk [vmem:[%s588_s3 + $0x28] sm:$0xff] %vm45_vm0, %v198_v45  ;;  %286 = vst.msk [vmem:[%s588_s3 + $0x78] sm:$0xff] %vm45_vm0, %v248_v46 }
  0xeb   :  { %275 = vst.msk [vmem:[%s588_s3 + $0x20] sm:$0xff] %vm45_vm0, %v193_v49  ;;  %285 = vst.msk [vmem:[%s588_s3 + $0x70] sm:$0xff] %vm45_vm0, %v243_v50  ;;  %v359_v51 = vpop.f32.mrb[6].mxu0  ;;  %v374_v52 = vpop.f32.mrb[6].mxu1 }
  0xec   :  { %v208_v53 = vadd.f32 %v359_v51, %v295_v26  ;;  %v258_v54 = vadd.f32 %v374_v52, %v295_v26  ;;  %v202_v55 = vpop.f32.mrb[7].mxu0  ;;  %v252_v56 = vpop.f32.mrb[7].mxu1 }
  0xed   :  { %v203_v57 = vadd.f32 %v295_v26, %v202_v55  ;;  %v253_v58 = vadd.f32 %v295_v26, %v252_v56 }
  0xee   :  { %278 = vst.msk [vmem:[%s588_s3 + $0x38] sm:$0xff] %vm45_vm0, %v208_v53  ;;  %288 = vst.msk [vmem:[%s588_s3 + $0x88] sm:$0xff] %vm45_vm0, %v258_v54 }
  0xef   :  { %277 = vst.msk [vmem:[%s588_s3 + $0x30] sm:$0xff] %vm45_vm0, %v203_v57  ;;  %287 = vst.msk [vmem:[%s588_s3 + $0x80] sm:$0xff] %vm45_vm0, %v253_v58  ;;  %v362_v59 = vpop.f32.mrb[8].mxu0  ;;  %v377_v60 = vpop.f32.mrb[8].mxu1 }
  0xf0   :  { %v218_v61 = vadd.f32 %v362_v59, %v295_v26  ;;  %v268_v62 = vadd.f32 %v377_v60, %v295_v26  ;;  %v212_v63 = vpop.f32.mrb[9].mxu0  ;;  %v262_v0 = vpop.f32.mrb[9].mxu1 }
  0xf1   :  { %v213_v1 = vadd.f32 %v295_v26, %v212_v63  ;;  %v263_v2 = vadd.f32 %v295_v26, %v262_v0 }
  0xf2   :  { %280 = vst.msk [vmem:[%s588_s3 + $0x48] sm:$0xff] %vm45_vm0, %v218_v61  ;;  %290 = vst.msk [vmem:[%s588_s3 + $0x98] sm:$0xff] %vm45_vm0, %v268_v62 }
  0xf3   :  { %279 = vst.msk [vmem:[%s588_s3 + $0x40] sm:$0xff] %vm45_vm0, %v213_v1  ;;  %289 = vst.msk [vmem:[%s588_s3 + $0x90] sm:$0xff] %vm45_vm0, %v263_v2 }

</bundles_post_ra>
